<compile_context>
chip_gen: v5e
topology: v5e:2x2
jax: 0.10.0
libtpu: 0.0.40
codegen_flags: <defaults>
</compile_context>

<pallas_src>
import functools
import math

import jax
import jax.numpy as jnp
from jax import lax
from jax.experimental import pallas as pl
from jax.experimental.pallas import tpu as pltpu


_MASK_VALUE = -1e30               # large finite negative: no -inf/NaN hazards with kv tiling
_VMEM_LIMIT = 32 * 1024 * 1024    # explicit scoped VMEM limit; safe on v5e/v6e/v7x


def _pick_tile(total, want):
    """Largest tile <= `want` that divides `total`; falls back to the full dim."""
    want = min(want, total)
    return want if total % want == 0 else total


# --------------------------------------------------------------------------- #
# Kernel 1: fused QKV projection, heads as a grid axis (lane-dense outputs).
# --------------------------------------------------------------------------- #
def _qkv_proj_kernel(x_ref, wq_ref, wk_ref, wv_ref, bq_ref, bk_ref, bv_ref,
                     q_ref, k_ref, v_ref, *, compute_dtype):
    x = x_ref[...].astype(compute_dtype)                       # (Tm, C)
    for w_ref, b_ref, o_ref in ((wq_ref, bq_ref, q_ref),
                                (wk_ref, bk_ref, k_ref),
                                (wv_ref, bv_ref, v_ref)):
        acc = jnp.dot(x, w_ref[...].astype(compute_dtype),
                      preferred_element_type=jnp.float32)      # (Tm, hd) f32
        o_ref[...] = (acc + b_ref[...]).astype(o_ref.dtype)


# --------------------------------------------------------------------------- #
# Kernel 2: causal flash attention (online softmax, tile-level causal skip).
# --------------------------------------------------------------------------- #
def _flash_attn_kernel(q_ref, k_ref, v_ref, o_ref, m_sc, l_sc, acc_sc, *,
                       scale, q_tile, kv_tile, compute_dtype):
    qi = pl.program_id(2)
    ki = pl.program_id(3)
    n_kv = pl.num_programs(3)

    @pl.when(ki == 0)
    def _init():
        m_sc[...] = jnp.full_like(m_sc, _MASK_VALUE)
        l_sc[...] = jnp.zeros_like(l_sc)
        acc_sc[...] = jnp.zeros_like(acc_sc)

    q_start = qi * q_tile
    k_start = ki * kv_tile

    # Skip kv tiles that lie entirely above the causal diagonal.
    # TODO(synk): the BlockSpec still DMAs skipped K/V tiles; fully skipping the DMA
    # would need a manual double-buffer / data-dependent index_map.
    @pl.when(k_start <= q_start + (q_tile - 1))
    def _compute():
        q = q_ref[...].astype(compute_dtype)                   # (Tq, hd)
        k = k_ref[...].astype(compute_dtype)                   # (Tk, hd)
        v = v_ref[...].astype(compute_dtype)                   # (Tk, hd)

        # q @ k^T via dot_general contracting the last dims -> no K transpose/relayout.
        s = lax.dot_general(q, k, (((1,), (1,)), ((), ())),
                            preferred_element_type=jnp.float32)
        s = s * scale                                          # (Tq, Tk) f32

        row = q_start + lax.broadcasted_iota(jnp.int32, s.shape, 0)
        col = k_start + lax.broadcasted_iota(jnp.int32, s.shape, 1)
        s = jnp.where(row >= col, s, _MASK_VALUE)

        m_prev = m_sc[...]
        m_new = jnp.maximum(m_prev, jnp.max(s, axis=-1, keepdims=True))
        alpha = jnp.exp(m_prev - m_new)                        # (Tq, 1) f32
        p = jnp.exp(s - m_new)                                 # (Tq, Tk) f32
        l_sc[...] = alpha * l_sc[...] + jnp.sum(p, axis=-1, keepdims=True)
        acc_sc[...] = alpha * acc_sc[...] + jnp.dot(
            p.astype(compute_dtype), v, preferred_element_type=jnp.float32)
        m_sc[...] = m_new

    @pl.when(ki == n_kv - 1)
    def _finalize():
        approx = jnp.dtype(compute_dtype) != jnp.dtype(jnp.float32)
        inv_l = pl.reciprocal(l_sc[...], approx=approx)        # EUP, not VALU divide
        o_ref[...] = (acc_sc[...] * inv_l).astype(o_ref.dtype)


# --------------------------------------------------------------------------- #
# Kernel 3: output projection, contracted over heads (no concatenate).
# --------------------------------------------------------------------------- #
def _out_proj_kernel(y_ref, w_ref, b_ref, o_ref, acc_sc, *, compute_dtype):
    h = pl.program_id(2)

    @pl.when(h == 0)
    def _init():
        acc_sc[...] = jnp.zeros_like(acc_sc)

    acc_sc[...] += jnp.dot(y_ref[...].astype(compute_dtype),
                           w_ref[...].astype(compute_dtype),
                           preferred_element_type=jnp.float32)

    @pl.when(h == pl.num_programs(2) - 1)
    def _finalize():
        o_ref[...] = (acc_sc[...] + b_ref[...]).astype(o_ref.dtype)


# --------------------------------------------------------------------------- #
# Wrapper
# --------------------------------------------------------------------------- #
def causal_self_attention(x, w_attn, b_attn, w_proj, b_proj, n_head,
                          *, compute_dtype=jnp.bfloat16, seq_tile=128):
    """Forward pass of GPT-style CausalSelfAttention.

    x: (B, T, C); w_attn: (C, 3C) (jnp.dot convention, i.e. nn.Linear.weight.T);
    b_attn: (3C,); w_proj: (C, C); b_proj: (C,).
    """
    B, T, C = x.shape
    assert C % n_head == 0
    hd = C // n_head
    scale = 1.0 / math.sqrt(hd)
    compute_dtype = jnp.dtype(compute_dtype)
    inter_dtype = compute_dtype            # dtype of q/k/v and per-head y in HBM

    tq = _pick_tile(T, seq_tile)           # sequence tile for all three kernels
    n_t = T // tq

    # One-time layout plumbing: heads-as-leading-axis weight/bias slabs so every
    # in-kernel operand and output slab is lane-dense (no lane slicing in kernels).
    wq, wk, wv = jnp.split(w_attn, 3, axis=1)                               # (C, C) each
    wq = wq.reshape(C, n_head, hd).transpose(1, 0, 2).astype(inter_dtype)   # (H, C, hd)
    wk = wk.reshape(C, n_head, hd).transpose(1, 0, 2).astype(inter_dtype)
    wv = wv.reshape(C, n_head, hd).transpose(1, 0, 2).astype(inter_dtype)
    bq, bk, bv = jnp.split(b_attn.astype(jnp.float32), 3)
    bq = bq.reshape(n_head, 1, hd)
    bk = bk.reshape(n_head, 1, hd)
    bv = bv.reshape(n_head, 1, hd)
    w_proj_h = w_proj.reshape(n_head, hd, C).astype(inter_dtype)            # (H, hd, C)
    b_proj2 = b_proj.reshape(1, C).astype(jnp.float32)

    # ---- 1) QKV projection: grid (B, H, T-tiles) -> q, k, v in (B, H, T, hd) ----
    head_spec = pl.BlockSpec((None, None, tq, hd), lambda b, h, t: (b, h, t, 0))
    q, k, v = pl.pallas_call(
        functools.partial(_qkv_proj_kernel, compute_dtype=compute_dtype),
        out_shape=tuple(jax.ShapeDtypeStruct((B, n_head, T, hd), inter_dtype)
                        for _ in range(3)),
        grid_spec=pltpu.PrefetchScalarGridSpec(
            num_scalar_prefetch=0,
            grid=(B, n_head, n_t),
            in_specs=[
                pl.BlockSpec((None, tq, C), lambda b, h, t: (b, t, 0)),     # x
                pl.BlockSpec((None, C, hd), lambda b, h, t: (h, 0, 0)),     # wq
                pl.BlockSpec((None, C, hd), lambda b, h, t: (h, 0, 0)),     # wk
                pl.BlockSpec((None, C, hd), lambda b, h, t: (h, 0, 0)),     # wv
                pl.BlockSpec((None, 1, hd), lambda b, h, t: (h, 0, 0)),     # bq
                pl.BlockSpec((None, 1, hd), lambda b, h, t: (h, 0, 0)),     # bk
                pl.BlockSpec((None, 1, hd), lambda b, h, t: (h, 0, 0)),     # bv
            ],
            out_specs=[head_spec, head_spec, head_spec],
        ),
        compiler_params=pltpu.CompilerParams(
            dimension_semantics=("parallel", "parallel", "arbitrary"),
            vmem_limit_bytes=_VMEM_LIMIT),
    )(x, wq, wk, wv, bq, bk, bv)

    # ---- 2) flash attention: grid (B, H, q-tiles, kv-tiles), kv innermost ----
    y_heads = pl.pallas_call(
        functools.partial(_flash_attn_kernel, scale=scale, q_tile=tq,
                          kv_tile=tq, compute_dtype=compute_dtype),
        out_shape=jax.ShapeDtypeStruct((B, n_head, T, hd), inter_dtype),
        grid_spec=pltpu.PrefetchScalarGridSpec(
            num_scalar_prefetch=0,
            grid=(B, n_head, n_t, n_t),
            in_specs=[
                pl.BlockSpec((None, None, tq, hd), lambda b, h, i, j: (b, h, i, 0)),
                pl.BlockSpec((None, None, tq, hd), lambda b, h, i, j: (b, h, j, 0)),
                pl.BlockSpec((None, None, tq, hd), lambda b, h, i, j: (b, h, j, 0)),
            ],
            out_specs=pl.BlockSpec((None, None, tq, hd),
                                   lambda b, h, i, j: (b, h, i, 0)),
            scratch_shapes=[
                pltpu.VMEM((tq, 1), jnp.float32),    # running max
                pltpu.VMEM((tq, 1), jnp.float32),    # running denominator
                pltpu.VMEM((tq, hd), jnp.float32),   # output accumulator
            ],
        ),
        compiler_params=pltpu.CompilerParams(
            dimension_semantics=("parallel", "parallel", "parallel", "arbitrary"),
            vmem_limit_bytes=_VMEM_LIMIT),
    )(q, k, v)

    # ---- 3) output projection: contract over heads into a lane-dense (tq, C) slab ----
    out = pl.pallas_call(
        functools.partial(_out_proj_kernel, compute_dtype=compute_dtype),
        out_shape=jax.ShapeDtypeStruct((B, T, C), x.dtype),
        grid_spec=pltpu.PrefetchScalarGridSpec(
            num_scalar_prefetch=0,
            grid=(B, n_t, n_head),
            in_specs=[
                pl.BlockSpec((None, None, tq, hd), lambda b, t, h: (b, h, t, 0)),  # y
                pl.BlockSpec((None, hd, C), lambda b, t, h: (h, 0, 0)),            # w_proj
                pl.BlockSpec((1, C), lambda b, t, h: (0, 0)),                      # b_proj
            ],
            out_specs=pl.BlockSpec((None, tq, C), lambda b, t, h: (b, t, 0)),
            scratch_shapes=[pltpu.VMEM((tq, C), jnp.float32)],
        ),
        compiler_params=pltpu.CompilerParams(
            dimension_semantics=("parallel", "parallel", "arbitrary"),
            vmem_limit_bytes=_VMEM_LIMIT),
    )(y_heads, w_proj_h, b_proj2)

    return out


def reference_attention(x, w_attn, b_attn, w_proj, b_proj, n_head):
    """Pure-JAX reference mirroring the PyTorch forward (f32)."""
    B, T, C = x.shape
    hd = C // n_head
    qkv = x @ w_attn + b_attn                                   # (B, T, 3C)
    q, k, v = jnp.split(qkv, 3, axis=-1)
    q = q.reshape(B, T, n_head, hd).transpose(0, 2, 1, 3)
    k = k.reshape(B, T, n_head, hd).transpose(0, 2, 1, 3)
    v = v.reshape(B, T, n_head, hd).transpose(0, 2, 1, 3)
    att = jnp.einsum("bhtd,bhsd->bhts", q, k) / math.sqrt(hd)
    mask = jnp.tril(jnp.ones((T, T), dtype=bool))
    att = jnp.where(mask[None, None], att, -jnp.inf)
    att = jax.nn.softmax(att, axis=-1)
    y = jnp.einsum("bhts,bhsd->bhtd", att, v)
    y = y.transpose(0, 2, 1, 3).reshape(B, T, C)
    return y @ w_proj + b_proj


if __name__ == "__main__":
    # config: block_size >= T, embed_dim divisible by n_head
    B, T, C, n_head = 2, 8, 32, 4

    key = jax.random.PRNGKey(0)
    kx, kw1, kb1, kw2, kb2 = jax.random.split(key, 5)

    x = jax.random.normal(kx, (B, T, C), dtype=jnp.float32)
    # Deterministic "nn.Linear-like" init (scaled normal); stored as (in, out).
    w_attn = jax.random.normal(kw1, (C, 3 * C), dtype=jnp.float32) * (1.0 / math.sqrt(C))
    b_attn = jax.random.normal(kb1, (3 * C,), dtype=jnp.float32) * 0.02
    w_proj = jax.random.normal(kw2, (C, C), dtype=jnp.float32) * (1.0 / math.sqrt(C))
    b_proj = jax.random.normal(kb2, (C,), dtype=jnp.float32) * 0.02

    ref = reference_attention(x, w_attn, b_attn, w_proj, b_proj, n_head)

    # f32 MXU path: tight check of the kernel structure against the reference.
    out_f32 = causal_self_attention(x, w_attn, b_attn, w_proj, b_proj, n_head,
                                    compute_dtype=jnp.float32)
    out_f32 = jax.block_until_ready(out_f32)
    assert out_f32.shape == (B, T, C)
    assert jnp.allclose(out_f32, ref, atol=2e-4, rtol=2e-4), "f32 mismatch vs reference"

    # bf16 MXU fast path (f32 accumulation, f32 softmax): looser check.
    out_bf16 = causal_self_attention(x, w_attn, b_attn, w_proj, b_proj, n_head,
                                     compute_dtype=jnp.bfloat16)
    out_bf16 = jax.block_until_ready(out_bf16)
    assert out_bf16.shape == (B, T, C)
    assert jnp.allclose(out_bf16, ref, atol=1e-1, rtol=1e-1), "bf16 mismatch vs reference"

    print("KERNEL_OK")
</pallas_src>

<mosaic_0001>
module attributes {stable_mosaic.version = 11 : i64} {
  func.func @_qkv_proj_kernel(%arg0: i32, %arg1: i32, %arg2: i32, %arg3: memref<1x8x32xf32, #tpu.memory_space<vmem>>, %arg4: memref<1x32x8xf32, #tpu.memory_space<vmem>>, %arg5: memref<1x32x8xf32, #tpu.memory_space<vmem>>, %arg6: memref<1x32x8xf32, #tpu.memory_space<vmem>>, %arg7: memref<1x1x8xf32, #tpu.memory_space<vmem>>, %arg8: memref<1x1x8xf32, #tpu.memory_space<vmem>>, %arg9: memref<1x1x8xf32, #tpu.memory_space<vmem>>, %arg10: memref<1x1x8x8xf32, #tpu.memory_space<vmem>>, %arg11: memref<1x1x8x8xf32, #tpu.memory_space<vmem>>, %arg12: memref<1x1x8x8xf32, #tpu.memory_space<vmem>>) attributes {dimension_semantics = [#tpu.dimension_semantics<parallel>, #tpu.dimension_semantics<parallel>, #tpu.dimension_semantics<arbitrary>], iteration_bounds = array<i64: 2, 4, 1>, scalar_prefetch = 0 : i64, scratch_operands = 0 : i64, tpu.core_type = #tpu.core_type<tc>, window_params = [{transform_indices = @transform_0, window_bounds = array<i64: 1, 8, 32>}, {transform_indices = @transform_1, window_bounds = array<i64: 1, 32, 8>}, {transform_indices = @transform_2, window_bounds = array<i64: 1, 32, 8>}, {transform_indices = @transform_3, window_bounds = array<i64: 1, 32, 8>}, {transform_indices = @transform_4, window_bounds = array<i64: 1, 1, 8>}, {transform_indices = @transform_5, window_bounds = array<i64: 1, 1, 8>}, {transform_indices = @transform_6, window_bounds = array<i64: 1, 1, 8>}, {transform_indices = @transform_7, window_bounds = array<i64: 1, 1, 8, 8>}, {transform_indices = @transform_8, window_bounds = array<i64: 1, 1, 8, 8>}, {transform_indices = @transform_9, window_bounds = array<i64: 1, 1, 8, 8>}]} {
    %c0 = arith.constant 0 : index
    %c0_0 = arith.constant 0 : index
    %c0_1 = arith.constant 0 : index
    %0 = vector.load %arg3[%c0, %c0_0, %c0_1] : memref<1x8x32xf32, #tpu.memory_space<vmem>>, vector<1x8x32xf32>
    %1 = vector.shape_cast %0 : vector<1x8x32xf32> to vector<8x32xf32>
    %c0_2 = arith.constant 0 : index
    %c0_3 = arith.constant 0 : index
    %c0_4 = arith.constant 0 : index
    %2 = vector.load %arg4[%c0_2, %c0_3, %c0_4] : memref<1x32x8xf32, #tpu.memory_space<vmem>>, vector<1x32x8xf32>
    %3 = vector.shape_cast %2 : vector<1x32x8xf32> to vector<32x8xf32>
    %cst = arith.constant dense<0.000000e+00> : vector<8x8xf32>
    %4 = tpu.matmul %1, %3, %cst {dimension_numbers = #tpu.dot_dimension_numbers<[1], [0], [0], [1], [0, 0, 1, 1], [], []>} : vector<8x32xf32>, vector<32x8xf32>, vector<8x8xf32> -> vector<8x8xf32>
    %c0_5 = arith.constant 0 : index
    %c0_6 = arith.constant 0 : index
    %c0_7 = arith.constant 0 : index
    %5 = vector.load %arg7[%c0_5, %c0_6, %c0_7] : memref<1x1x8xf32, #tpu.memory_space<vmem>>, vector<1x1x8xf32>
    %6 = vector.shape_cast %5 : vector<1x1x8xf32> to vector<1x8xf32>
    %7 = vector.broadcast %6 : vector<1x8xf32> to vector<8x8xf32>
    %8 = arith.addf %4, %7 : vector<8x8xf32>
    %c0_8 = arith.constant 0 : index
    %c0_9 = arith.constant 0 : index
    %c0_10 = arith.constant 0 : index
    %c0_11 = arith.constant 0 : index
    %9 = vector.load %arg10[%c0_8, %c0_9, %c0_10, %c0_11] : memref<1x1x8x8xf32, #tpu.memory_space<vmem>>, vector<1x1x8x8xf32>
    %10 = vector.shape_cast %9 : vector<1x1x8x8xf32> to vector<8x8xf32>
    %11 = vector.shape_cast %8 : vector<8x8xf32> to vector<1x1x8x8xf32>
    tpu.vector_store %arg10[%c0_8, %c0_9, %c0_10, %c0_11], %11 {strides = array<i32>} : memref<1x1x8x8xf32, #tpu.memory_space<vmem>>, vector<1x1x8x8xf32>,
    %c0_12 = arith.constant 0 : index
    %c0_13 = arith.constant 0 : index
    %c0_14 = arith.constant 0 : index
    %12 = vector.load %arg5[%c0_12, %c0_13, %c0_14] : memref<1x32x8xf32, #tpu.memory_space<vmem>>, vector<1x32x8xf32>
    %13 = vector.shape_cast %12 : vector<1x32x8xf32> to vector<32x8xf32>
    %cst_15 = arith.constant dense<0.000000e+00> : vector<8x8xf32>
    %14 = tpu.matmul %1, %13, %cst_15 {dimension_numbers = #tpu.dot_dimension_numbers<[1], [0], [0], [1], [0, 0, 1, 1], [], []>} : vector<8x32xf32>, vector<32x8xf32>, vector<8x8xf32> -> vector<8x8xf32>
    %c0_16 = arith.constant 0 : index
    %c0_17 = arith.constant 0 : index
    %c0_18 = arith.constant 0 : index
    %15 = vector.load %arg8[%c0_16, %c0_17, %c0_18] : memref<1x1x8xf32, #tpu.memory_space<vmem>>, vector<1x1x8xf32>
    %16 = vector.shape_cast %15 : vector<1x1x8xf32> to vector<1x8xf32>
    %17 = vector.broadcast %16 : vector<1x8xf32> to vector<8x8xf32>
    %18 = arith.addf %14, %17 : vector<8x8xf32>
    %c0_19 = arith.constant 0 : index
    %c0_20 = arith.constant 0 : index
    %c0_21 = arith.constant 0 : index
    %c0_22 = arith.constant 0 : index
    %19 = vector.load %arg11[%c0_19, %c0_20, %c0_21, %c0_22] : memref<1x1x8x8xf32, #tpu.memory_space<vmem>>, vector<1x1x8x8xf32>
    %20 = vector.shape_cast %19 : vector<1x1x8x8xf32> to vector<8x8xf32>
    %21 = vector.shape_cast %18 : vector<8x8xf32> to vector<1x1x8x8xf32>
    tpu.vector_store %arg11[%c0_19, %c0_20, %c0_21, %c0_22], %21 {strides = array<i32>} : memref<1x1x8x8xf32, #tpu.memory_space<vmem>>, vector<1x1x8x8xf32>,
    %c0_23 = arith.constant 0 : index
    %c0_24 = arith.constant 0 : index
    %c0_25 = arith.constant 0 : index
    %22 = vector.load %arg6[%c0_23, %c0_24, %c0_25] : memref<1x32x8xf32, #tpu.memory_space<vmem>>, vector<1x32x8xf32>
    %23 = vector.shape_cast %22 : vector<1x32x8xf32> to vector<32x8xf32>
    %cst_26 = arith.constant dense<0.000000e+00> : vector<8x8xf32>
    %24 = tpu.matmul %1, %23, %cst_26 {dimension_numbers = #tpu.dot_dimension_numbers<[1], [0], [0], [1], [0, 0, 1, 1], [], []>} : vector<8x32xf32>, vector<32x8xf32>, vector<8x8xf32> -> vector<8x8xf32>
    %c0_27 = arith.constant 0 : index
    %c0_28 = arith.constant 0 : index
    %c0_29 = arith.constant 0 : index
    %25 = vector.load %arg9[%c0_27, %c0_28, %c0_29] : memref<1x1x8xf32, #tpu.memory_space<vmem>>, vector<1x1x8xf32>
    %26 = vector.shape_cast %25 : vector<1x1x8xf32> to vector<1x8xf32>
    %27 = vector.broadcast %26 : vector<1x8xf32> to vector<8x8xf32>
    %28 = arith.addf %24, %27 : vector<8x8xf32>
    %c0_30 = arith.constant 0 : index
    %c0_31 = arith.constant 0 : index
    %c0_32 = arith.constant 0 : index
    %c0_33 = arith.constant 0 : index
    %29 = vector.load %arg12[%c0_30, %c0_31, %c0_32, %c0_33] : memref<1x1x8x8xf32, #tpu.memory_space<vmem>>, vector<1x1x8x8xf32>
    %30 = vector.shape_cast %29 : vector<1x1x8x8xf32> to vector<8x8xf32>
    %31 = vector.shape_cast %28 : vector<8x8xf32> to vector<1x1x8x8xf32>
    tpu.vector_store %arg12[%c0_30, %c0_31, %c0_32, %c0_33], %31 {strides = array<i32>} : memref<1x1x8x8xf32, #tpu.memory_space<vmem>>, vector<1x1x8x8xf32>,
    return
  }
  func.func @transform_0(%arg0: i32, %arg1: i32, %arg2: i32) -> (i32, i32, i32) {
    %c0_i32 = arith.constant 0 : i32
    %c0_i32_0 = arith.constant 0 : i32
    return %arg0, %arg2, %c0_i32 : i32, i32, i32
  }
  func.func @transform_1(%arg0: i32, %arg1: i32, %arg2: i32) -> (i32, i32, i32) {
    %c0_i32 = arith.constant 0 : i32
    %c0_i32_0 = arith.constant 0 : i32
    %c0_i32_1 = arith.constant 0 : i32
    return %arg1, %c0_i32, %c0_i32_0 : i32, i32, i32
  }
  func.func @transform_2(%arg0: i32, %arg1: i32, %arg2: i32) -> (i32, i32, i32) {
    %c0_i32 = arith.constant 0 : i32
    %c0_i32_0 = arith.constant 0 : i32
    %c0_i32_1 = arith.constant 0 : i32
    return %arg1, %c0_i32, %c0_i32_0 : i32, i32, i32
  }
  func.func @transform_3(%arg0: i32, %arg1: i32, %arg2: i32) -> (i32, i32, i32) {
    %c0_i32 = arith.constant 0 : i32
    %c0_i32_0 = arith.constant 0 : i32
    %c0_i32_1 = arith.constant 0 : i32
    return %arg1, %c0_i32, %c0_i32_0 : i32, i32, i32
  }
  func.func @transform_4(%arg0: i32, %arg1: i32, %arg2: i32) -> (i32, i32, i32) {
    %c0_i32 = arith.constant 0 : i32
    %c0_i32_0 = arith.constant 0 : i32
    %c0_i32_1 = arith.constant 0 : i32
    return %arg1, %c0_i32, %c0_i32_0 : i32, i32, i32
  }
  func.func @transform_5(%arg0: i32, %arg1: i32, %arg2: i32) -> (i32, i32, i32) {
    %c0_i32 = arith.constant 0 : i32
    %c0_i32_0 = arith.constant 0 : i32
    %c0_i32_1 = arith.constant 0 : i32
    return %arg1, %c0_i32, %c0_i32_0 : i32, i32, i32
  }
  func.func @transform_6(%arg0: i32, %arg1: i32, %arg2: i32) -> (i32, i32, i32) {
    %c0_i32 = arith.constant 0 : i32
    %c0_i32_0 = arith.constant 0 : i32
    %c0_i32_1 = arith.constant 0 : i32
    return %arg1, %c0_i32, %c0_i32_0 : i32, i32, i32
  }
  func.func @transform_7(%arg0: i32, %arg1: i32, %arg2: i32) -> (i32, i32, i32, i32) {
    %c0_i32 = arith.constant 0 : i32
    %c0_i32_0 = arith.constant 0 : i32
    return %arg0, %arg1, %arg2, %c0_i32 : i32, i32, i32, i32
  }
  func.func @transform_8(%arg0: i32, %arg1: i32, %arg2: i32) -> (i32, i32, i32, i32) {
    %c0_i32 = arith.constant 0 : i32
    %c0_i32_0 = arith.constant 0 : i32
    return %arg0, %arg1, %arg2, %c0_i32 : i32, i32, i32, i32
  }
  func.func @transform_9(%arg0: i32, %arg1: i32, %arg2: i32) -> (i32, i32, i32, i32) {
    %c0_i32 = arith.constant 0 : i32
    %c0_i32_0 = arith.constant 0 : i32
    return %arg0, %arg1, %arg2, %c0_i32 : i32, i32, i32, i32
  }
}

</mosaic_0001>

<bundles_post_ra>
// kernel: tpu_custom_call.1
= control target key start
LH: loop header
LB: loop body
LE: loop exit
PB: predicated region body
PF: predicated region fallthrough
CT: control target
= control target key end

     0   :  { %s1415_s0 = inlined_call_operand.vmem [shape: f32[2,8,32], index: 0, kind: input, shape index: {}]   ;;  %s1416_s1 = inlined_call_operand.vmem [shape: f32[4,32,8], index: 1, kind: input, shape index: {}]   ;;  %s1417_s2 = inlined_call_operand.vmem [shape: f32[4,32,8], index: 2, kind: input, shape index: {}]   ;;  %s1418_s3 = inlined_call_operand.vmem [shape: f32[4,32,8], index: 3, kind: input, shape index: {}]   ;;  %s1419_s4 = inlined_call_operand.vmem [shape: f32[4,1,8], index: 4, kind: input, shape index: {}]   ;;  %s1420_s5 = inlined_call_operand.vmem [shape: f32[4,1,8], index: 5, kind: input, shape index: {}]   ;;  %s1421_s6 = inlined_call_operand.vmem [shape: f32[4,1,8], index: 6, kind: input, shape index: {}]   ;;  %s1422_s7 = inlined_call_operand.hbm [shape: f32[2,4,8,8], index: 7, kind: output, shape index: {0}]   ;;  %s1423_s8 = inlined_call_operand.hbm [shape: f32[2,4,8,8], index: 8, kind: output, shape index: {1}]   ;;  %s1424_s9 = inlined_call_operand.hbm [shape: f32[2,4,8,8], index: 9, kind: output, shape index: {2}]  }
   0x1   :  { %1435 = sst [smem:[#allocation17_spill]] %s1415_s0 }
   0x2   :  { %15 = vsyncpa [#allocation3], 0 }
   0x3   :  { %17 = vsyncpa [#allocation3 + $0x1], 0 }
   0x4   :  { %18 = vsyncpa [#allocation5], 0 }
   0x5   :  { %20 = vsyncpa [#allocation5 + $0x1], 0  ;;  %s1179_s30 = smov 0   ;;  %s1181_s10 = smov 0  }
   0x6   :  { %s1183_s11 = smov 0   ;;  %s1185_s12 = smov 0  }
   0x7   :  { %s1187_s13 = smov 0   ;;  %s1189_s14 = smov 0  }
   0x8   :  { %s1191_s15 = smov 0   ;;  %s1193_s16 = smov 0  }
   0x9 LB: > { %1436 = sst [smem:[#allocation9_spill]] %s1099_s30  ;;  %s1426_s17 = sadd.s32 4294967295, %s1127_s16   ;;  %s1127_s16 = sphi %s1193_s16, %s26_s16   ;;  %s1123_s15 = sphi %s1191_s15, %s1458_s15   ;;  %s1119_s14 = sphi %s1189_s14, %s1457_s14   ;;  %s1115_s13 = sphi %s1187_s13, %s1456_s13   ;;  %s1111_s12 = sphi %s1185_s12, %s1455_s12   ;;  %s1107_s11 = sphi %s1183_s11, %s1454_s11   ;;  %s1103_s10 = sphi %s1181_s10, %s1460_s10   ;;  %s1099_s30 = sphi %s1179_s30, %s1459_s30  }
   0xa   : > { %1437 = sst [smem:[#allocation10_spill]] %s1107_s11  ;;  %s1425_s18 = sadd.s32 4294967294, %s1127_s16  }
   0xb   : > { %1438 = sst [smem:[#allocation11_spill]] %s1119_s14  ;;  %s41_s19 = sadd.s32 1, %s1119_s14 }
   0xc   : > { %1439 = sst [smem:[#allocation12_spill]] %s1123_s15  ;;  %p43_p0 = scmp.ge.s32.totalorder %s41_s19, 4 }
   0xd   : > { %s45_s20 = sadd.s32 1, %s1123_s15  ;;  %p250_p1 = scmp.ne.s32.totalorder %s1107_s11, %s1103_s10 }
   0xe   : > { %p251_p2 = scmp.eq.s32.totalorder %s1426_s17, 7  ;;  %s1462_s19 = smov (%p43_p0, %s41_s19), 0 }
   0xf   : > { %1440 = sst [smem:[#allocation13_spill]] %s1462_s19  ;;  %s1464_s20 = smov (!%p43_p0, %s45_s20), %s1123_s15 }
  0x10   : > { %s234_s21 = ssub.s32 %s1119_s14, %s1462_s19  ;;  %p1232_p3 = por %p251_p2, %p250_p1 }
  0x11   : > { %p47_p4 = scmp.ge.s32.totalorder %s1464_s20, 2  ;;  %p256_p5 = scmp.ne.s32.totalorder %s1103_s10, %s1099_s30 }
  0x12   : > { %p257_p6 = scmp.eq.s32.totalorder %s1425_s18, 7  ;;  %p861_p7 = scmp.ge.s32.totalorder %s1127_s16, 1 }
  0x13   : > { %s1466_s20 = smov (%p47_p4, %s1464_s20), 0  ;;  %p387_p9 = scmp.lt.s32.totalorder %s1127_s16, 9 }
  0x14   : > { %1442 = sst [smem:[#allocation14_spill]] %s1466_s20  ;;  %p1243_p8 = por %p257_p6, %p256_p5 }
  0x15   : > { %s233_s24 = ssub.s32 %s1123_s15, %s1466_s20  ;;  %s240_s25 = sadd.s32 1, %s1107_s11 }
  0x16   : > { %s1443_s23 = scalar_select %p1243_p8, 1, 0 }
  0x17   : > { %s235_s26 = sor.u32 %s234_s21, %s233_s24  ;;  %p388_p10 = pnand %p861_p7, %p387_p9 }
  0x18   : > { %1444 = sst [smem:[#allocation15_spill]] %s1443_s23  ;;  %p238_p11 = scmp.eq.s32.totalorder %s235_s26, 0 }
  0x19   : > { %391 = sbr.rel (%p388_p10) target bundleno = 198 (0xc6), region = 48  ;;  %p466_p12 = scmp.lt.s32.totalorder (!%p388_p10), %s1111_s12, 3 }
  0x1a   : > { %s1252_s27 = scalar_select %p238_p11, %s1107_s11, %s240_s25  }
  0x1b   : > { %p459_p13 = scmp.lt.s32.totalorder (!%p388_p10), %s1115_s13, 1  ;;  %s1446_s0 = sld [smem:[#allocation17_spill]] (!%p388_p10) }
  0x1c   : > { %1445 = sst [smem:[#allocation16_spill]] %s1252_s27  ;;  %s1447_s17 = sadd.s32 (!%p388_p10), 4294967295, %s1127_s16  }
  0x1d   : > { %s1294_s20 = sand.u32 (!%p388_p10), 1, %s1447_s17  }
  0x1e   : > { %s1257_s28 = scalar_select %p466_p12, %s1111_s12, 3  ;;  %vm499_vm0 = vcmask 261120   ;;  %vm523_vm1 = vcmask 64512  }
  0x1f   : > { %s460_s29 = scalar_select %p459_p13, %s1115_s13, 1 }
  0x20   : > { %s886_s18 = sshll.u32 %s1257_s28, 5  ;;  %s483_s15 = scalar_lea.vmem %s1419_s4, %s1257_s28 }
  0x21   : > { %s480_s26 = scalar_lea.vmem %s1418_s3, %s886_s18  ;;  %s475_s14 = scalar_lea.vmem %s1417_s2, %s886_s18  ;;  %v971_v14 = vld [vmem:[%s483_s15] ss:$0 sm:$0xff] }
  0x22   : > { %v557_v0 = vld [vmem:[%s480_s26 + $0x18] sm:$0xff]  ;;  %v556_v1 = vld [vmem:[%s480_s26 + $0x10] sm:$0xff]  ;;  %s470_s23 = scalar_lea.vmem %s1416_s1, %s886_s18  ;;  %s865_s30 = sshll.u32 %s460_s29, 3  ;;  %v555_v4 = vld [vmem:[%s480_s26 + $0x8] sm:$0xff] }
  0x23   : > { %574 = vmatpush.msra.mxu2 %v557_v0  ;;  %v528_v2 = vld [vmem:[%s475_s14 + $0x18] sm:$0xff]  ;;  %v527_v5 = vld [vmem:[%s475_s14 + $0x10] sm:$0xff]  ;;  %s465_s24 = scalar_lea.vmem %s1446_s0, %s865_s30  ;;  %v526_v7 = vld [vmem:[%s475_s14 + $0x8] sm:$0xff]  ;;  %s489_s27 = scalar_lea.vmem %s1421_s6, %s1257_s28 }
  0x24   : > { %v494_v3 = vld [vmem:[%s470_s23 + $0x18] sm:$0xff]  ;;  %545 = vmatpush.msra.mxu1 %v528_v2  ;;  %v493_v6 = vld [vmem:[%s470_s23 + $0x10] sm:$0xff]  ;;  %v492_v8 = vld [vmem:[%s470_s23 + $0x8] sm:$0xff]  ;;  %s1434_s29 = sand.u32 1, %s1103_s10  }
  0x25   : > { %515 = vmatpush.msra.mxu0 %v494_v3  ;;  %575 = vmatpush.msra.mxu2 %v556_v1  ;;  %v554_v9 = vld [vmem:[%s480_s26] sm:$0xff] }
  0x26   : > { %546 = vmatpush.msra.mxu1 %v527_v5  ;;  %v490_v10 = vld [vmem:[%s465_s24] sm:$0xff] }
  0x27   : > { %516 = vmatpush.msra.mxu0 %v493_v6  ;;  %576 = vmatpush.msra.mxu2 %v555_v4  ;;  %v525_v11 = vld [vmem:[%s475_s14] sm:$0xff]  ;;  %s878_s14 = sshll.u32 %s1115_s13, 2 }
  0x28   : > { %547 = vmatpush.msra.mxu1 %v526_v7  ;;  %v491_v12 = vld [vmem:[%s470_s23] sm:$0xff]  ;;  %s605_s25 = sadd.s32 %s1111_s12, %s878_s14  ;;  %s1290_s23 = sshll.u32 %s1434_s29, 3 }
  0x29   : > { %517 = vmatpush.msra.mxu0 %v492_v8  ;;  %577 = vmatpush.msra.mxu2 %v554_v9  ;;  %s879_s26 = sshll.u32 %s605_s25, 3  ;;  %s1448_s14 = scalar_lea.vmem %s1420_s5, %s1257_s28  ;;  %v972_v19 = vld [vmem:[%s489_s27] ss:$0 sm:$0xff] }
  0x2a   : > { %874 = vmatmul.msk.f32.vlgmr.msra.gmra.mxu2 %vm499_vm0, %v490_v10  ;;  %548 = vmatpush.msra.mxu1 %v525_v11  ;;  %s624_s11 = scalar_lea.hbm %s1423_s8, %s879_s26  ;;  %s607_s13 = scalar_lea.hbm %s1422_s7, %s879_s26  ;;  %v970_v13 = vld [vmem:[%s1448_s14] ss:$0 sm:$0xff] }
  0x2b   : > { %518 = vmatpush.msra.mxu0 %v491_v12  ;;  %873 = vmatmul.msk.f32.vlgmr.msra.gmra.mxu1 %vm499_vm0, %v490_v10  ;;  %s451_s29 = scalar_lea.vmem [#allocation4], %s1290_s23  ;;  %s1310_s25 = sshll.u32 %s624_s11, 4  ;;  %s629_s25 = int_to_ptr.hbm [resolvable:$true] %s1310_s25 }
  0x2c   : > { %872 = vmatmul.msk.f32.vlgmr.msra.gmra.mxu0 %vm499_vm0, %v490_v10  ;;  %s1308_s0 = sshll.u32 %s451_s29, 4  ;;  %s444_s17 = scalar_lea.vmem [#allocation2], %s1290_s23  ;;  %s627_s0 = int_to_ptr.vmem [resolvable:$true] %s1308_s0 }
  0x2d   : > { %s1315_s24 = sshll.u32 %s444_s17, 4  ;;  %s1317_s30 = sshll.u32 %s607_s13, 4  ;;  %s610_s24 = int_to_ptr.vmem [resolvable:$true] %s1315_s24  ;;  %s612_s30 = int_to_ptr.hbm [resolvable:$true] %s1317_s30 }
  0x2e   : > { %s641_s15 = scalar_lea.hbm %s1424_s9, %s879_s26  ;;  %s458_s11 = scalar_lea.vmem [#allocation6], %s1290_s23 }
  0x2f   : > { %s1330_s18 = sshll.u32 %s458_s11, 4  ;;  %s1332_s19 = sshll.u32 %s641_s15, 4  ;;  %s644_s18 = int_to_ptr.vmem [resolvable:$true] %s1330_s18  ;;  %s646_s19 = int_to_ptr.hbm [resolvable:$true] %s1332_s19 }
  0x30   : > { %s589_s13 = scalar_lea.sflag [#allocation5], %s1294_s20  ;;  %s987_s12 = sshra.s32 %s629_s25, 4  ;;  %s988_s12 = int_to_ptr.hbm [resolvable:$true] %s987_s12 }
  0x31   : > { %s989_s26 = scalar_lea.hbm %s988_s12, 8  ;;  %s993_s28 = scalar_lea.hbm %s1423_s8, 64 }
  0x32   : > { %p990_p0 = scmp.ne.s32.totalorder %s988_s12, %s989_s26  ;;  %p994_p4 = scmp.lt.s32.totalorder %s988_s12, %s1423_s8 }
  0x33   : > { %p995_p5 = scmp.lt.s32.totalorder %s993_s28, %s989_s26 }
  0x34   : > { %p991_p1 = pnand %p990_p0, %p1232_p3 }
  0x35   : > { %p996_p6 = por %p995_p5, %p994_p4 }
  0x36   : > { %p992_p2 = pneg %p991_p1 }
  0x38   : > { %p997_p7 = pnand %p996_p6, %p992_p2 }
  0xa8   : > { %v550_v15 = vpop.f32.mrf.mxu1 }
  0xa9   : > { %v551_v16 = vadd.f32 %v970_v13, %v550_v15  ;;  %v520_v17 = vpop.f32.mrf.mxu0 }
  0xaa   : > { %v521_v18 = vadd.f32 %v971_v14, %v520_v17 }
  0xab   : > { %553 = vst.msk [vmem:[%s451_s29] sm:$0xff] %vm523_vm1, %v551_v16 }
  0xac   : > { %1000 = shalt.err (!%p997_p7)
}
  0xad   : > { %890 = dma.vmem_to_hbm [thread:$0]  (%p1232_p3), %s627_s0, 128, %s629_s25, %s589_s13   ;;  %524 = vst.msk [vmem:[%s444_s17] sm:$0xff] %vm523_vm1, %v521_v18  ;;  %v579_v20 = vpop.f32.mrf.mxu2 }
  0xae   : > { %s1449_s15 = sand.u32 1, %s1103_s10   ;;  %s1015_s12 = sshra.s32 %s612_s30, 4  ;;  %s1016_s12 = int_to_ptr.hbm [resolvable:$true] %s1015_s12 }
  0xaf   : > { %s584_s14 = scalar_lea.sflag [#allocation3], %s1449_s15  ;;  %s1017_s26 = scalar_lea.hbm %s1016_s12, 8 }
  0xb0   : > { %p1018_p9 = scmp.ne.s32.totalorder %s1016_s12, %s1017_s26  ;;  %s1021_s21 = scalar_lea.hbm %s1422_s7, 64 }
  0xb1   : > { %p1022_p12 = scmp.lt.s32.totalorder %s1016_s12, %s1422_s7  ;;  %p1023_p13 = scmp.lt.s32.totalorder %s1021_s21, %s1017_s26 }
  0xb2   : > { %p1019_p10 = pnand %p1018_p9, %p1232_p3 }
  0xb3   : > { %p1024_p0 = por %p1023_p13, %p1022_p12 }
  0xb4   : > { %p1020_p11 = pneg %p1019_p10 }
  0xb6   : > { %p1025_p1 = pnand %p1024_p0, %p1020_p11 }
  0xb8   : > { %1028 = shalt.err (!%p1025_p1)
}
  0xb9   : > { %889 = dma.vmem_to_hbm [thread:$0]  (%p1232_p3), %s610_s24, 128, %s612_s30, %s584_s14   ;;  %v580_v21 = vadd.f32 %v972_v19, %v579_v20 }
  0xba   : > { %s1043_s25 = sshra.s32 %s646_s19, 4  ;;  %s1049_s26 = scalar_lea.hbm %s1424_s9, 64  ;;  %s1044_s25 = int_to_ptr.hbm [resolvable:$true] %s1043_s25 }
  0xbb   : > { %582 = vst.msk [vmem:[%s458_s11] sm:$0xff] %vm523_vm1, %v580_v21  ;;  %s1045_s17 = scalar_lea.hbm %s1044_s25, 8  ;;  %p1050_p6 = scmp.lt.s32.totalorder %s1044_s25, %s1424_s9 }
  0xbc   : > { %p1046_p2 = scmp.ne.s32.totalorder %s1044_s25, %s1045_s17  ;;  %p1051_p7 = scmp.lt.s32.totalorder %s1049_s26, %s1045_s17 }
  0xbe   : > { %p1047_p4 = pnand %p1046_p2, %p1232_p3  ;;  %p1052_p9 = por %p1051_p7, %p1050_p6 }
  0xc0   : > { %p1048_p5 = pneg %p1047_p4 }
  0xc2   : > { %p1053_p10 = pnand %p1052_p9, %p1048_p5 }
  0xc4   : > { %1056 = shalt.err (!%p1053_p10)
}
  0xc5   : > { %891 = dma.vmem_to_hbm [thread:$0]  (%p1232_p3), %s644_s18, 128, %s646_s19, %s589_s13  }
  0xc6 PF: > { %s1450_s23 = sld [smem:[#allocation9_spill]]  ;;  %p905_p11 = scmp.ge.s32.totalorder %s1127_s16, 2 }
  0xc8   : > { %p896_p12 = pnand %p905_p11, %p1243_p8 }
  0xca   : > { %p897_p13 = pneg %p896_p12 }
  0xcc   : > { %s657_s30 = sand.u32 1, %s1450_s23  }
  0xcd   : > { %s658_s11 = scalar_lea.sflag [#allocation3], %s657_s30 }
  0xce   : > { %1090 = dma.done.wait (%p897_p13), %s658_s11, 128  }
  0xcf   : > { %1092 = vsyncadd (%p897_p13), %s658_s11, 4294967168  ;;  %s1452_s14 = sadd.s32 4294967294, %s1127_s16  }
  0xd0   : > { %s667_s21 = sand.u32 1, %s1452_s14  }
  0xd1   : > { %s668_s29 = scalar_lea.sflag [#allocation5], %s667_s21 }
  0xd2   : > { %1094 = dma.done.wait (%p897_p13), %s668_s29, 256  }
  0xd3   : > { %1096 = vsyncadd (%p897_p13), %s668_s29, 4294967040  ;;  %s26_s16 = sadd.s32 1, %s1127_s16   ;;  %s1453_s22 = sld [smem:[#allocation10_spill]] }
  0xd4   : > { %p23_p3 = scmp.ge.s32.totalorder %s26_s16, 10   ;;  %s1454_s11 = sld [smem:[#allocation16_spill]] }
  0xd5   : > { %s1455_s12 = sld [smem:[#allocation11_spill]]  ;;  %s1459_s30 = smov %s1103_s10 }
  0xd6   : > { %s1456_s13 = sld [smem:[#allocation12_spill]]  ;;  %25 = sbr.rel (!%p23_p3) target bundleno = 9 (0x9), region = 133 }
  0xd7   : > { %s1457_s14 = sld [smem:[#allocation13_spill]] }
  0xd8   : > { %s1458_s15 = sld [smem:[#allocation14_spill]] }
  0xd9   : > { %s1460_s10 = smov %s1453_s22 }
  0xdb   :  { %684 = vsyncpa [#allocation3], 1 }
  0xdc   :  { %686 = vsyncpa [#allocation3 + $0x1], 1 }
  0xdd   :  { %687 = vsyncpa [#allocation5], 1 }
  0xde   :  { %689 = vsyncpa [#allocation5 + $0x1], 1 }

</bundles_post_ra>
